<compile_context>
chip_gen: v7x
topology: tpu7x:2x2x1
jax: 0.10.0
libtpu: 0.0.40
codegen_flags: <defaults>
</compile_context>

<pallas_src>
import math

import jax
import jax.numpy as jnp
from jax.experimental import pallas as pl
from jax.experimental.pallas import tpu as pltpu


def _round_up(a, m):
    return (a + m - 1) // m * m


def mlp4_kernel(xT_ref, w1, b1, w2, b2, w3, b3, w4, b4, oT_ref):
    """Fused forward pass in transposed (features, batch-tile) layout."""
    xT = xT_ref[...]                          # (d_in, tm) f32
    d_in = w1.shape[1]

    # ---- layer 1: K = d_in is tiny (2 for the PINN case) -> do it as d_in
    # broadcast FMAs on the VPU instead of a near-empty MXU pass.
    if d_in <= 8:
        w1v = w1[...]                         # (h1, d_in)
        acc = w1v[:, 0:1] * xT[0:1, :]        # (h1, 1) * (1, tm) -> (h1, tm)
        for k in range(1, d_in):              # static unroll
            acc = acc + w1v[:, k:k + 1] * xT[k:k + 1, :]
        h = jnp.tanh(acc + b1[...])
    else:
        h = jnp.tanh(
            jnp.dot(w1[...], xT, preferred_element_type=jnp.float32) + b1[...]
        )

    # ---- layers 2 & 3: square hidden matmuls on the MXU.
    h = jnp.tanh(jnp.dot(w2[...], h, preferred_element_type=jnp.float32) + b2[...])
    h = jnp.tanh(jnp.dot(w3[...], h, preferred_element_type=jnp.float32) + b3[...])

    # ---- layer 4 (no activation); (d_out, tm) result is already lane-dense.
    out = jnp.dot(w4[...], h, preferred_element_type=jnp.float32) + b4[...]
    oT_ref[...] = out.astype(oT_ref.dtype)


def net4_forward(x, params, *, tm=512):
    """Net4 forward via one fused Pallas kernel, tiling the batch dimension.

    params: [(w1, b1), ..., (w4, b4)] with PyTorch nn.Linear layout:
            w_i: (out_i, in_i), b_i: (out_i, 1).
    x: (n, d_in).  Returns (n, d_out).
    """
    (w1, b1), (w2, b2), (w3, b3), (w4, b4) = params
    n, d_in = x.shape
    h1, h2, h3 = w1.shape[0], w2.shape[0], w3.shape[0]
    d_out = w4.shape[0]

    # Batch tile: large (amortize per-step overhead), multiple of 256 so the
    # M dimension fills full MXU passes on v5e (128-wide) and v6e/v7x (256).
    tm = max(256, _round_up(min(tm, _round_up(n, 256)), 256))
    n_pad = _round_up(n, tm)

    xT = jnp.transpose(x)                                  # (d_in, n)
    if n_pad != n:
        xT = jnp.pad(xT, ((0, 0), (0, n_pad - n)))

    grid = (n_pad // tm,)

    def full_spec(arr):
        # Weights / biases: whole array is one block, identical for all tiles.
        return pl.BlockSpec(arr.shape, lambda i: (0,) * arr.ndim)

    weight_elems = sum(int(a.size) for a in (w1, b1, w2, b2, w3, b3, w4, b4))
    cost = pl.CostEstimate(
        flops=2 * n_pad * (d_in * h1 + h1 * h2 + h2 * h3 + h3 * d_out),
        transcendentals=n_pad * (h1 + h2 + h3),
        bytes_accessed=4 * (n_pad * (d_in + d_out) + weight_elems),
    )

    outT = pl.pallas_call(
        mlp4_kernel,
        out_shape=jax.ShapeDtypeStruct((d_out, n_pad), x.dtype),
        grid_spec=pltpu.PrefetchScalarGridSpec(
            num_scalar_prefetch=0,
            grid=grid,
            in_specs=[
                pl.BlockSpec((d_in, tm), lambda i: (0, i)),  # x^T: tiled batch
                full_spec(w1), full_spec(b1),
                full_spec(w2), full_spec(b2),
                full_spec(w3), full_spec(b3),
                full_spec(w4), full_spec(b4),
            ],
            out_specs=pl.BlockSpec((d_out, tm), lambda i: (0, i)),
        ),
        compiler_params=pltpu.CompilerParams(
            dimension_semantics=("parallel",),
        ),
        cost_estimate=cost,
    )(xT, w1, b1, w2, b2, w3, b3, w4, b4)

    return jnp.transpose(outT[:, :n])                      # (n, d_out)


def init_params(key, layer_sizes):
    """Deterministic init mirroring nn.Linear's default U(-1/sqrt(fan_in), +).

    Weights kept in PyTorch (out, in) layout; biases as (out, 1) columns.
    """
    params = []
    for i in range(4):
        fan_in, fan_out = layer_sizes[i], layer_sizes[i + 1]
        key, kw, kb = jax.random.split(key, 3)
        bound = 1.0 / math.sqrt(fan_in)
        w = jax.random.uniform(kw, (fan_out, fan_in), jnp.float32, -bound, bound)
        b = jax.random.uniform(kb, (fan_out, 1), jnp.float32, -bound, bound)
        params.append((w, b))
    return params


def net4_reference(x, params):
    h = x
    for i, (w, b) in enumerate(params):
        h = jnp.dot(h, w.T, precision=jax.lax.Precision.HIGHEST) + b[:, 0]
        if i < 3:
            h = jnp.tanh(h)
    return h


if __name__ == "__main__":
    # PINN-style MLP: 2 inputs -> 32 -> 32 -> 32 -> 1.
    # batch=1024 with tm=512 -> 2 parallel grid steps (keeps both v7x TCs busy).
    layer_sizes = [2, 32, 32, 32, 1]
    batch = 1024

    key = jax.random.PRNGKey(0)
    key, kx = jax.random.split(key)
    x = jax.random.normal(kx, (batch, layer_sizes[0]), jnp.float32)

    params = init_params(key, layer_sizes)

    y = net4_forward(x, params, tm=512)
    y = jax.block_until_ready(y)

    y_ref = net4_reference(x, params)
    assert y.shape == (batch, layer_sizes[-1])
    assert jnp.allclose(y, y_ref, atol=1e-4, rtol=1e-4), float(
        jnp.max(jnp.abs(y - y_ref))
    )

    print("KERNEL_OK")
</pallas_src>

<mosaic_0001>
module attributes {stable_mosaic.version = 11 : i64} {
  func.func @mlp4_kernel(%arg0: i32, %arg1: memref<2x512xf32, #tpu.memory_space<vmem>>, %arg2: memref<32x2xf32, #tpu.memory_space<vmem>>, %arg3: memref<32x1xf32, #tpu.memory_space<vmem>>, %arg4: memref<32x32xf32, #tpu.memory_space<vmem>>, %arg5: memref<32x1xf32, #tpu.memory_space<vmem>>, %arg6: memref<32x32xf32, #tpu.memory_space<vmem>>, %arg7: memref<32x1xf32, #tpu.memory_space<vmem>>, %arg8: memref<1x32xf32, #tpu.memory_space<vmem>>, %arg9: memref<1x1xf32, #tpu.memory_space<vmem>>, %arg10: memref<1x512xf32, #tpu.memory_space<vmem>>) attributes {dimension_semantics = [#tpu.dimension_semantics<parallel>], iteration_bounds = array<i64: 2>, scalar_prefetch = 0 : i64, scratch_operands = 0 : i64, tpu.core_type = #tpu.core_type<tc>, window_params = [{transform_indices = @transform_0, window_bounds = array<i64: 2, 512>}, {pipeline_mode = #tpu.pipeline_mode<synchronous>, transform_indices = @transform_1, window_bounds = array<i64: 32, 2>}, {pipeline_mode = #tpu.pipeline_mode<synchronous>, transform_indices = @transform_2, window_bounds = array<i64: 32, 1>}, {pipeline_mode = #tpu.pipeline_mode<synchronous>, transform_indices = @transform_3, window_bounds = array<i64: 32, 32>}, {pipeline_mode = #tpu.pipeline_mode<synchronous>, transform_indices = @transform_4, window_bounds = array<i64: 32, 1>}, {pipeline_mode = #tpu.pipeline_mode<synchronous>, transform_indices = @transform_5, window_bounds = array<i64: 32, 32>}, {pipeline_mode = #tpu.pipeline_mode<synchronous>, transform_indices = @transform_6, window_bounds = array<i64: 32, 1>}, {pipeline_mode = #tpu.pipeline_mode<synchronous>, transform_indices = @transform_7, window_bounds = array<i64: 1, 32>}, {pipeline_mode = #tpu.pipeline_mode<synchronous>, transform_indices = @transform_8, window_bounds = array<i64: 1, 1>}, {transform_indices = @transform_9, window_bounds = array<i64: 1, 512>}]} {
    %c0 = arith.constant 0 : index
    %c0_0 = arith.constant 0 : index
    %0 = vector.load %arg1[%c0, %c0_0] : memref<2x512xf32, #tpu.memory_space<vmem>>, vector<2x512xf32>
    %c0_1 = arith.constant 0 : index
    %c0_2 = arith.constant 0 : index
    %1 = vector.load %arg2[%c0_1, %c0_2] : memref<32x2xf32, #tpu.memory_space<vmem>>, vector<32x2xf32>
    %2 = vector.extract_strided_slice %1 {offsets = [0, 0], sizes = [32, 1], strides = [1, 1]} : vector<32x2xf32> to vector<32x1xf32>
    %3 = vector.extract_strided_slice %0 {offsets = [0, 0], sizes = [1, 512], strides = [1, 1]} : vector<2x512xf32> to vector<1x512xf32>
    %4 = vector.broadcast %2 : vector<32x1xf32> to vector<32x512xf32>
    %5 = vector.broadcast %3 : vector<1x512xf32> to vector<32x512xf32>
    %6 = arith.mulf %4, %5 : vector<32x512xf32>
    %7 = vector.extract_strided_slice %1 {offsets = [0, 1], sizes = [32, 1], strides = [1, 1]} : vector<32x2xf32> to vector<32x1xf32>
    %8 = vector.extract_strided_slice %0 {offsets = [1, 0], sizes = [1, 512], strides = [1, 1]} : vector<2x512xf32> to vector<1x512xf32>
    %9 = vector.broadcast %7 : vector<32x1xf32> to vector<32x512xf32>
    %10 = vector.broadcast %8 : vector<1x512xf32> to vector<32x512xf32>
    %11 = arith.mulf %9, %10 : vector<32x512xf32>
    %12 = arith.addf %6, %11 : vector<32x512xf32>
    %c0_3 = arith.constant 0 : index
    %c0_4 = arith.constant 0 : index
    %13 = vector.load %arg3[%c0_3, %c0_4] : memref<32x1xf32, #tpu.memory_space<vmem>>, vector<32x1xf32>
    %14 = vector.broadcast %13 : vector<32x1xf32> to vector<32x512xf32>
    %15 = arith.addf %12, %14 : vector<32x512xf32>
    %16 = math.tanh %15 : vector<32x512xf32>
    %c0_5 = arith.constant 0 : index
    %c0_6 = arith.constant 0 : index
    %17 = vector.load %arg4[%c0_5, %c0_6] : memref<32x32xf32, #tpu.memory_space<vmem>>, vector<32x32xf32>
    %cst = arith.constant dense<0.000000e+00> : vector<32x512xf32>
    %18 = tpu.matmul %17, %16, %cst {dimension_numbers = #tpu.dot_dimension_numbers<[1], [0], [0], [1], [0, 0, 1, 1], [], []>} : vector<32x32xf32>, vector<32x512xf32>, vector<32x512xf32> -> vector<32x512xf32>
    %c0_7 = arith.constant 0 : index
    %c0_8 = arith.constant 0 : index
    %19 = vector.load %arg5[%c0_7, %c0_8] : memref<32x1xf32, #tpu.memory_space<vmem>>, vector<32x1xf32>
    %20 = vector.broadcast %19 : vector<32x1xf32> to vector<32x512xf32>
    %21 = arith.addf %18, %20 : vector<32x512xf32>
    %22 = math.tanh %21 : vector<32x512xf32>
    %c0_9 = arith.constant 0 : index
    %c0_10 = arith.constant 0 : index
    %23 = vector.load %arg6[%c0_9, %c0_10] : memref<32x32xf32, #tpu.memory_space<vmem>>, vector<32x32xf32>
    %cst_11 = arith.constant dense<0.000000e+00> : vector<32x512xf32>
    %24 = tpu.matmul %23, %22, %cst_11 {dimension_numbers = #tpu.dot_dimension_numbers<[1], [0], [0], [1], [0, 0, 1, 1], [], []>} : vector<32x32xf32>, vector<32x512xf32>, vector<32x512xf32> -> vector<32x512xf32>
    %c0_12 = arith.constant 0 : index
    %c0_13 = arith.constant 0 : index
    %25 = vector.load %arg7[%c0_12, %c0_13] : memref<32x1xf32, #tpu.memory_space<vmem>>, vector<32x1xf32>
    %26 = vector.broadcast %25 : vector<32x1xf32> to vector<32x512xf32>
    %27 = arith.addf %24, %26 : vector<32x512xf32>
    %28 = math.tanh %27 : vector<32x512xf32>
    %c0_14 = arith.constant 0 : index
    %c0_15 = arith.constant 0 : index
    %29 = vector.load %arg8[%c0_14, %c0_15] : memref<1x32xf32, #tpu.memory_space<vmem>>, vector<1x32xf32>
    %cst_16 = arith.constant dense<0.000000e+00> : vector<1x512xf32>
    %30 = tpu.matmul %29, %28, %cst_16 {dimension_numbers = #tpu.dot_dimension_numbers<[1], [0], [0], [1], [0, 0, 1, 1], [], []>} : vector<1x32xf32>, vector<32x512xf32>, vector<1x512xf32> -> vector<1x512xf32>
    %c0_17 = arith.constant 0 : index
    %c0_18 = arith.constant 0 : index
    %31 = vector.load %arg9[%c0_17, %c0_18] : memref<1x1xf32, #tpu.memory_space<vmem>>, vector<1x1xf32>
    %32 = vector.broadcast %31 : vector<1x1xf32> to vector<1x512xf32>
    %33 = arith.addf %30, %32 : vector<1x512xf32>
    %c0_19 = arith.constant 0 : index
    %c0_20 = arith.constant 0 : index
    %34 = vector.load %arg10[%c0_19, %c0_20] : memref<1x512xf32, #tpu.memory_space<vmem>>, vector<1x512xf32>
    tpu.vector_store %arg10[%c0_19, %c0_20], %33 {strides = array<i32>} : memref<1x512xf32, #tpu.memory_space<vmem>>, vector<1x512xf32>,
    return
  }
  func.func @transform_0(%arg0: i32) -> (i32, i32) {
    %c0_i32 = arith.constant 0 : i32
    %c0_i32_0 = arith.constant 0 : i32
    return %c0_i32, %arg0 : i32, i32
  }
  func.func @transform_1(%arg0: i32) -> (i32, i32) {
    %c0_i32 = arith.constant 0 : i32
    %c0_i32_0 = arith.constant 0 : i32
    %c0_i32_1 = arith.constant 0 : i32
    return %c0_i32, %c0_i32_0 : i32, i32
  }
  func.func @transform_2(%arg0: i32) -> (i32, i32) {
    %c0_i32 = arith.constant 0 : i32
    %c0_i32_0 = arith.constant 0 : i32
    %c0_i32_1 = arith.constant 0 : i32
    return %c0_i32, %c0_i32_0 : i32, i32
  }
  func.func @transform_3(%arg0: i32) -> (i32, i32) {
    %c0_i32 = arith.constant 0 : i32
    %c0_i32_0 = arith.constant 0 : i32
    %c0_i32_1 = arith.constant 0 : i32
    return %c0_i32, %c0_i32_0 : i32, i32
  }
  func.func @transform_4(%arg0: i32) -> (i32, i32) {
    %c0_i32 = arith.constant 0 : i32
    %c0_i32_0 = arith.constant 0 : i32
    %c0_i32_1 = arith.constant 0 : i32
    return %c0_i32, %c0_i32_0 : i32, i32
  }
  func.func @transform_5(%arg0: i32) -> (i32, i32) {
    %c0_i32 = arith.constant 0 : i32
    %c0_i32_0 = arith.constant 0 : i32
    %c0_i32_1 = arith.constant 0 : i32
    return %c0_i32, %c0_i32_0 : i32, i32
  }
  func.func @transform_6(%arg0: i32) -> (i32, i32) {
    %c0_i32 = arith.constant 0 : i32
    %c0_i32_0 = arith.constant 0 : i32
    %c0_i32_1 = arith.constant 0 : i32
    return %c0_i32, %c0_i32_0 : i32, i32
  }
  func.func @transform_7(%arg0: i32) -> (i32, i32) {
    %c0_i32 = arith.constant 0 : i32
    %c0_i32_0 = arith.constant 0 : i32
    %c0_i32_1 = arith.constant 0 : i32
    return %c0_i32, %c0_i32_0 : i32, i32
  }
  func.func @transform_8(%arg0: i32) -> (i32, i32) {
    %c0_i32 = arith.constant 0 : i32
    %c0_i32_0 = arith.constant 0 : i32
    %c0_i32_1 = arith.constant 0 : i32
    return %c0_i32, %c0_i32_0 : i32, i32
  }
  func.func @transform_9(%arg0: i32) -> (i32, i32) {
    %c0_i32 = arith.constant 0 : i32
    %c0_i32_0 = arith.constant 0 : i32
    return %c0_i32, %arg0 : i32, i32
  }
}

</mosaic_0001>

<bundles_post_ra>
// kernel: tpu_custom_call.1
= control target key start
LH: loop header
LB: loop body
LE: loop exit
PB: predicated region body
PF: predicated region fallthrough
CT: control target
= control target key end

     0   :  { %s1894_s0 = inlined_call_operand.vmem [shape: f32[2,1024], index: 0, kind: input, shape index: {}]   ;;  %s1895_s1 = inlined_call_operand.vmem [shape: f32[32,2], index: 1, kind: input, shape index: {}]   ;;  %s1896_s2 = inlined_call_operand.vmem [shape: f32[32,1], index: 2, kind: input, shape index: {}]   ;;  %s1897_s3 = inlined_call_operand.vmem [shape: f32[32,32], index: 3, kind: input, shape index: {}]   ;;  %s1898_s4 = inlined_call_operand.vmem [shape: f32[32,1], index: 4, kind: input, shape index: {}]   ;;  %s1899_s5 = inlined_call_operand.vmem [shape: f32[32,32], index: 5, kind: input, shape index: {}]   ;;  %s1900_s6 = inlined_call_operand.vmem [shape: f32[32,1], index: 6, kind: input, shape index: {}]   ;;  %s1901_s7 = inlined_call_operand.vmem [shape: f32[1,32], index: 7, kind: input, shape index: {}]   ;;  %s1902_s8 = inlined_call_operand.<no memory space> [shape: f32[1,1], index: 8, kind: input, shape index: {}]   ;;  %s1903_s9 = inlined_call_operand.hbm [shape: f32[1,1024], index: 9, kind: output, shape index: {}]  }
   0x1   :  { %v14_v0 = vstv %s1902_s8 }
   0x2   :  { %15 = vst [vmem:[#allocation2] sm:$0x1] %v14_v0 }
   0x3   :  { %16 = vsyncpa [#allocation4], 0 }
   0x4   :  { %18 = vsyncpa [#allocation4 + $0x1], 0  ;;  %s1633_s11 = smov 0   ;;  %s1635_s12 = smov 0  }
   0x5   :  { %s1637_s13 = smov 0   ;;  %s1639_s14 = smov 0  }
   0x6 LB: > { %s1654_s8 = sadd.s32 4294967295, %s1573_s14   ;;  %s1287_s15 = sadd.s32 4294967294, %s1573_s14   ;;  %s1573_s14 = sphi %s1639_s14, %s1909_s14   ;;  %s1569_s13 = sphi %s1637_s13, %s1908_s13   ;;  %s1565_s12 = sphi %s1635_s12, %s1907_s12   ;;  %s1561_s11 = sphi %s1633_s11, %s1906_s11  }
   0x7   : > { %s1658_s16 = sadd.s32 1, %s1573_s14   ;;  %s225_s17 = sadd.s32 1, %s1569_s13 }
   0x8   : > { %s222_s18 = ssub.s32 %s1573_s14, %s1658_s16  ;;  %p235_p0 = scmp.ne.s32.totalorder %s1569_s13, %s1565_s12 }
   0x9   : > { %p223_p1 = scmp.eq.s32.totalorder %s222_s18, 0  ;;  %p236_p2 = scmp.eq.s32.totalorder %s1654_s8, 1 }
   0xa   : > { %p241_p3 = scmp.ne.s32.totalorder %s1565_s12, %s1561_s11  ;;  %p242_p4 = scmp.eq.s32.totalorder %s1287_s15, 1 }
   0xb   : > { %s1669_s19 = scalar_select %p223_p1, %s1569_s13, %s225_s17  }
   0xc   : > { %p1671_p5 = por %p236_p2, %p235_p0  ;;  %p1675_p6 = por %p242_p4, %p241_p3 }
   0xd   : > { %p1290_p7 = scmp.ge.s32.totalorder %s1573_s14, 1  ;;  %p293_p8 = scmp.lt.s32.totalorder %s1573_s14, 3 }
   0xf   : > { %p294_p9 = pnand %p1290_p7, %p293_p8 }
  0x10   : > { %v339_v1 = vld [vmem:[%s1895_s1 + $0x10] sm:$0xff] (!%p294_p9)  ;;  %v337_v2 = vld [vmem:[%s1895_s1] sm:$0xff] (!%p294_p9)  ;;  %v1575_v3 = vmov (!%p294_p9), 1   ;;  %v338_v4 = vld [vmem:[%s1895_s1 + $0x8] sm:$0xff] (!%p294_p9)  ;;  %v1576_v5 = vmov (!%p294_p9), 0   ;;  %v1577_v20 = vmov (!%p294_p9), 0.0   ;;  %v362_v21 = vlaneseq (!%p294_p9) }
  0x11   : > { %297 = sbr.rel (%p294_p9) target bundleno = 922 (0x39a), region = 56  ;;  %1411 = vset.pattern.permute.xlu0 (!%p294_p9), %v1575_v3  ;;  %1409 = vset.pattern.permute.xlu1 (!%p294_p9), %v1575_v3  ;;  %v340_v6 = vld [vmem:[%s1895_s1 + $0x18] sm:$0xff] (!%p294_p9)  ;;  %v499_v7 = vld [vmem:[%s1896_s2 + $0x8] sm:$0xff] (!%p294_p9)  ;;  %v498_v8 = vld [vmem:[%s1896_s2] sm:$0xff] (!%p294_p9)  ;;  %s1292_s28 = sshll.u32 (!%p294_p9), %s1654_s8, 2  ;;  %vm582_vm0 = vcmask (!%p294_p9), 261120  }
  0x12   : > { %423 = vperm.xlu0 (!%p294_p9), %1411, %v339_v1   ;;  %415 = vperm.xlu1 (!%p294_p9), %1409, %v337_v2   ;;  %v558_v9 = vld [vmem:[%s1898_s4] sm:$0xff] (!%p294_p9)  ;;  %v500_v10 = vld [vmem:[%s1896_s2 + $0x10] sm:$0xff] (!%p294_p9)  ;;  %v501_v12 = vld [vmem:[%s1896_s2 + $0x18] sm:$0xff] (!%p294_p9)  ;;  %p330_p10 = scmp.lt.s32.totalorder (!%p294_p9), %s1292_s28, 7  ;;  %v1733_v22 = vshrl.u32 (!%p294_p9), %v362_v21, 7  ;;  %s326_s25 = sand.u32 (!%p294_p9), 1, %s1565_s12  }
  0x13   : > { %v560_v11 = vld [vmem:[%s1898_s4 + $0x10] sm:$0xff] (!%p294_p9)  ;;  %v793_v13 = vld [vmem:[%s1900_s6] sm:$0xff] (!%p294_p9)  ;;  %v559_v14 = vld [vmem:[%s1898_s4 + $0x8] sm:$0xff] (!%p294_p9)  ;;  %659 = vmatprep.mubr.f32.mxu0 (!%p294_p9), %v1577_v20  ;;  %748 = vmatprep.mubr.f32.mxu1 (!%p294_p9), %v1577_v20  ;;  %s1291_s26 = sshll.u32 (!%p294_p9), %s326_s25, 2  ;;  %s1317_s27 = sshll.u32 (!%p294_p9), %s1654_s8, 6  ;;  %vm1210_vm1 = vcmp.lt.s32.totalorder (!%p294_p9), %v362_v21, 512 }
  0x14   : > { %v795_v15 = vld [vmem:[%s1900_s6 + $0x10] sm:$0xff] (!%p294_p9)  ;;  %v561_v16 = vld [vmem:[%s1898_s4 + $0x18] sm:$0xff] (!%p294_p9)  ;;  %v1024_v17 = vld [vmem:[#allocation2] sm:$0x1] (!%p294_p9)  ;;  %v432_v23 = vsub.s32 (!%p294_p9), 1, %v1733_v22  ;;  %v436_v24 = vsub.s32 (!%p294_p9), 3, %v1733_v22 }
  0x15   : > { %v794_v18 = vld [vmem:[%s1900_s6 + $0x8] sm:$0xff] (!%p294_p9)  ;;  %v796_v19 = vld [vmem:[%s1900_s6 + $0x18] sm:$0xff] (!%p294_p9)  ;;  %v440_v25 = vsub.s32 (!%p294_p9), 5, %v1733_v22  ;;  %v444_v29 = vsub.s32 (!%p294_p9), 7, %v1733_v22  ;;  %v1743_v30 = vsub.s32 (!%p294_p9), 0, %v1733_v22  ;;  %v368_v31 = vsub.s32 (!%p294_p9), 2, %v1733_v22 }
  0x16   : > { %1412 = vset.pattern.permute.xlu0 (!%p294_p9), %v1576_v5  ;;  %419 = vperm.xlu1 (!%p294_p9), %1409, %v338_v4   ;;  %v372_v32 = vsub.s32 (!%p294_p9), 4, %v1733_v22  ;;  %v376_v35 = vsub.s32 (!%p294_p9), 6, %v1733_v22  ;;  %s1214_s17 = scalar_lea.sflag (!%p294_p9), [#allocation4], %s326_s25  ;;  %s1579_s8 = smov (!%p294_p9), [#allocation3]  }
  0x17   : > { %343 = vperm.xlu0 (!%p294_p9), %1412, %v337_v2   ;;  %s1515_s22 = sshll.u32 (!%p294_p9), %s1579_s8, 4  ;;  %s1516_s22 = int_to_ptr.vmem [resolvable:$false] %s1515_s22 }
  0x18   : > { %s1911_s28 = smov (!%p330_p10, %s1292_s28), 7  ;;  %s1517_s23 = scalar_lea.vmem %s1516_s22, 128 }
  0x19   : > { %s1293_s29 = sshll.u32 %s1911_s28, 1  ;;  %s328_s28 = scalar_lea.vmem [#allocation3], %s1291_s26 }
  0x1a   : > { %1410 = vset.pattern.permute.xlu1 %v1576_v5  ;;  %s333_s15 = scalar_lea.vmem %s1894_s0, %s1293_s29  ;;  %s1228_s29 = sshll.u32 %s328_s28, 4  ;;  %s1854_s29 = int_to_ptr.vmem [resolvable:$true] %s1228_s29 }
  0x1b   : > { %348 = vperm.xlu0 %1412, %v338_v4   ;;  %358 = vperm.xlu1 %1410, %v340_v6   ;;  %v336_v27 = vld [vmem:[%s333_s15] sm:$0xff]  ;;  %s1852_s15 = scalar_lea.hbm %s1903_s9, %s1317_s27  ;;  %s1511_s18 = scalar_lea.vmem %s1854_s29, 64 }
  0x1c   : > { %v433_v33 = vrot.slane %v336_v27, %v432_v23  ;;  %v437_v34 = vrot.slane %v336_v27, %v436_v24  ;;  %v441_v36 = vrot.slane %v336_v27, %v440_v25  ;;  %v445_v38 = vrot.slane %v336_v27, %v444_v29  ;;  %p1512_p11 = scmp.ne.s32.totalorder %s1854_s29, %s1511_s18  ;;  %p1518_p0 = scmp.lt.s32.totalorder %s1854_s29, %s1516_s22 }
  0x1d   : > { %v365_v40 = vrot.slane %v336_v27, %v1743_v30  ;;  %v369_v41 = vrot.slane %v336_v27, %v368_v31  ;;  %v373_v42 = vrot.slane %v336_v27, %v372_v32  ;;  %v377_v45 = vrot.slane %v336_v27, %v376_v35  ;;  %p1519_p1 = scmp.lt.s32.totalorder %s1517_s23, %s1511_s18 }
  0x1e   : > { %v453_v43 = vrot.slane %v433_v33, %v432_v23  ;;  %v457_v44 = vrot.slane %v437_v34, %v432_v23  ;;  %v1749_v46 = vrot.slane %v441_v36, %v432_v23  ;;  %v1751_v47 = vrot.slane %v445_v38, %v432_v23  ;;  %p1513_p12 = pnand %p1512_p11, %p1671_p5 }
  0x1f   : > { %353 = vperm.xlu0 %1412, %v339_v1   ;;  %1413 = vset.pattern.permute.xlu1 %v1575_v3  ;;  %v385_v48 = vrot.slane %v365_v40, %v1743_v30  ;;  %v389_v49 = vrot.slane %v369_v41, %v1743_v30  ;;  %v1758_v52 = vrot.slane %v373_v42, %v1743_v30  ;;  %p1520_p2 = por %p1519_p1, %p1518_p0 }
  0x20   : > { %427 = vperm.xlu1 %1413, %v340_v6   ;;  %v1761_v55 = vrot.slane %v377_v45, %v1743_v30  ;;  %p1514_p13 = pneg %p1513_p12 }
  0x22   : > { %p1521_p3 = pnand %p1520_p2, %p1514_p13 }
  0x23   : > { %509 = vperm.xlu0 %1412, %v499_v7  }
  0x24   : > { %1414 = vset.pattern.permute.xlu1 %v1576_v5 }
  0x25   : > { %504 = vperm.xlu1 %1414, %v498_v8  }
  0x27   : > { %564 = vperm.xlu0 %1412, %v558_v9  }
  0x29   : > { %514 = vperm.xlu1 %1414, %v500_v10  }
  0x2b   : > { %574 = vperm.xlu0 %1412, %v560_v11  }
  0x2d   : > { %519 = vperm.xlu1 %1414, %v501_v12  }
  0x2f   : > { %799 = vperm.xlu0 %1412, %v793_v13  }
  0x31   : > { %569 = vperm.xlu1 %1414, %v559_v14  }
  0x33   : > { %809 = vperm.xlu0 %1412, %v795_v15  }
  0x35   : > { %579 = vperm.xlu1 %1414, %v561_v16  }
  0x37   : > { %1027 = vperm.xlu0 %1412, %v1024_v17  }
  0x39   : > { %804 = vperm.xlu1 %1414, %v794_v18  }
  0x3d   : > { %814 = vperm.xlu1 %1414, %v796_v19  }
  0x91   : > { %v416_v26 = vpop.permute.xlu1 %415  ;;  %v424_v28 = vpop.permute.xlu0 %423 }
  0x92   : > { %v466_v53 = vmul.f32 %v453_v43, %v416_v26  ;;  %v467_v54 = vmul.f32 %v457_v44, %v416_v26  ;;  %v468_v56 = vmul.f32 %v1749_v46, %v416_v26  ;;  %v469_v60 = vmul.f32 %v1751_v47, %v416_v26 }
  0x93   : > { %v474_v1 = vmul.f32 %v453_v43, %v424_v28  ;;  %v475_v6 = vmul.f32 %v457_v44, %v424_v28  ;;  %v476_v10 = vmul.f32 %v1749_v46, %v424_v28  ;;  %v477_v14 = vmul.f32 %v1751_v47, %v424_v28 }
  0x95   : > { %v420_v37 = vpop.permute.xlu1 %419 }
  0x96   : > { %v344_v39 = vpop.permute.xlu0 %343  ;;  %v470_v2 = vmul.f32 %v453_v43, %v420_v37  ;;  %v471_v3 = vmul.f32 %v457_v44, %v420_v37  ;;  %v472_v4 = vmul.f32 %v1749_v46, %v420_v37  ;;  %v473_v7 = vmul.f32 %v1751_v47, %v420_v37 }
  0x97   : > { %v398_v61 = vmul.f32 %v385_v48, %v344_v39  ;;  %v399_v62 = vmul.f32 %v389_v49, %v344_v39  ;;  %v400_v8 = vmul.f32 %v1758_v52, %v344_v39  ;;  %v401_v9 = vmul.f32 %v1761_v55, %v344_v39 }
  0x99   : > { %v482_v17 = vadd.f32 %v466_v53, %v398_v61  ;;  %v483_v18 = vadd.f32 %v467_v54, %v399_v62  ;;  %v484_v31 = vadd.f32 %v468_v56, %v400_v8  ;;  %v485_v32 = vadd.f32 %v469_v60, %v401_v9 }
  0x9a   : > { %v349_v50 = vpop.permute.xlu0 %348  ;;  %v1755_v51 = vpop.permute.xlu1 %358 }
  0x9b   : > { %v402_v57 = vmul.f32 %v385_v48, %v349_v50  ;;  %v403_v58 = vmul.f32 %v389_v49, %v349_v50  ;;  %v404_v59 = vmul.f32 %v1758_v52, %v349_v50  ;;  %v405_v63 = vmul.f32 %v1761_v55, %v349_v50 }
  0x9c   : > { %v410_v33 = vmul.f32 %v385_v48, %v1755_v51  ;;  %v411_v28 = vmul.f32 %v389_v49, %v1755_v51 }
  0x9d   : > { %v486_v11 = vadd.f32 %v470_v2, %v402_v57  ;;  %v487_v12 = vadd.f32 %v471_v3, %v403_v58  ;;  %v488_v13 = vadd.f32 %v472_v4, %v404_v59  ;;  %v489_v16 = vadd.f32 %v473_v7, %v405_v63 }
  0x9e   : > { %v354_v0 = vpop.permute.xlu0 %353  ;;  %v413_v59 = vmul.f32 %v1761_v55, %v1755_v51 }
  0x9f   : > { %v428_v5 = vpop.permute.xlu1 %427  ;;  %v406_v19 = vmul.f32 %v385_v48, %v354_v0  ;;  %v407_v26 = vmul.f32 %v389_v49, %v354_v0  ;;  %v408_v34 = vmul.f32 %v1758_v52, %v354_v0  ;;  %v409_v36 = vmul.f32 %v1761_v55, %v354_v0 }
  0xa0   : > { %v478_v38 = vmul.f32 %v453_v43, %v428_v5  ;;  %v479_v41 = vmul.f32 %v457_v44, %v428_v5  ;;  %v480_v48 = vmul.f32 %v1749_v46, %v428_v5  ;;  %v481_v49 = vmul.f32 %v1751_v47, %v428_v5 }
  0xa1   : > { %v490_v40 = vadd.f32 %v474_v1, %v406_v19  ;;  %v491_v50 = vadd.f32 %v475_v6, %v407_v26  ;;  %v492_v53 = vadd.f32 %v476_v10, %v408_v34  ;;  %v493_v56 = vadd.f32 %v477_v14, %v409_v36 }
  0xa2   : > { %v510_v15 = vpop.permute.xlu0 %509  ;;  %v412_v43 = vmul.f32 %v1758_v52, %v1755_v51  ;;  %v494_v44 = vadd.f32 %v478_v38, %v410_v33  ;;  %v495_v61 = vadd.f32 %v479_v41, %v411_v28  ;;  %v497_v47 = vadd.f32 %v481_v49, %v413_v59 }
  0xa3   : > { %v526_v23 = vadd.f32 %v510_v15, %v486_v11  ;;  %v527_v24 = vadd.f32 %v510_v15, %v487_v12  ;;  %v528_v25 = vadd.f32 %v510_v15, %v488_v13  ;;  %v529_v27 = vadd.f32 %v510_v15, %v489_v16 }
  0xa4   : > { %v505_v29 = vpop.permute.xlu1 %504  ;;  %v496_v62 = vadd.f32 %v480_v48, %v412_v43 }
  0xa5   : > { %1415 = vtanh.f32 %v526_v23  ;;  %v522_v35 = vadd.f32 %v505_v29, %v482_v17  ;;  %v523_v37 = vadd.f32 %v505_v29, %v483_v18  ;;  %v524_v39 = vadd.f32 %v505_v29, %v484_v31  ;;  %v556_v31 = vld [vmem:[%s1897_s3 + $0x10] sm:$0xff] }
  0xa6   : > { %1417 = vtanh.f32 %v527_v24  ;;  %v525_v42 = vadd.f32 %v505_v29, %v485_v32  ;;  %v555_v29 = vld [vmem:[%s1897_s3 + $0x8] sm:$0xff]  ;;  %v557_v32 = vld [vmem:[%s1897_s3 + $0x18] sm:$0xff]  ;;  %v565_v33 = vpop.permute.xlu0 %564 }
  0xa7   : > { %1419 = vtanh.f32 %v528_v25 }
  0xa8   : > { %1421 = vtanh.f32 %v529_v27  ;;  %v515_v45 = vpop.permute.xlu1 %514  ;;  %v554_v27 = vld [vmem:[%s1897_s3] sm:$0xff] }
  0xa9   : > { %1423 = vtanh.f32 %v522_v35  ;;  %v530_v54 = vadd.f32 %v515_v45, %v490_v40  ;;  %v531_v57 = vadd.f32 %v515_v45, %v491_v50  ;;  %v532_v58 = vadd.f32 %v515_v45, %v492_v53 }
  0xaa   : > { %1425 = vtanh.f32 %v523_v37  ;;  %v533_v60 = vadd.f32 %v515_v45, %v493_v56  ;;  %v575_v56 = vpop.permute.xlu0 %574 }
  0xab   : > { %1427 = vtanh.f32 %v524_v39 }
  0xac   : > { %1429 = vtanh.f32 %v525_v42  ;;  %v520_v46 = vpop.permute.xlu1 %519 }
  0xad   : > { %1431 = vtanh.f32 %v530_v54  ;;  %v534_v63 = vadd.f32 %v520_v46, %v494_v44  ;;  %v535_v0 = vadd.f32 %v520_v46, %v495_v61  ;;  %v536_v2 = vadd.f32 %v520_v46, %v496_v62 }
  0xae   : > { %1433 = vtanh.f32 %v531_v57  ;;  %v537_v3 = vadd.f32 %v520_v46, %v497_v47 }
  0xaf   : > { %v1416_v1 = vpop.eup %1415  ;;  %1435 = vtanh.f32 %v532_v58 }
  0xb0   : > { %v1418_v52 = vpop.eup %1417  ;;  %1437 = vtanh.f32 %v533_v60  ;;  %v570_v40 = vpop.permute.xlu1 %569 }
  0xb1   : > { %v1420_v4 = vpop.eup %1419  ;;  %1439 = vtanh.f32 %v534_v63 }
  0xb2   : > { %v1422_v5 = vpop.eup %1421  ;;  %1441 = vtanh.f32 %v535_v0 }
  0xb3   : > { %v1424_v51 = vpop.eup %1423  ;;  %1443 = vtanh.f32 %v536_v2 }
  0xb4   : > { %v1426_v55 = vpop.eup %1425  ;;  %1445 = vtanh.f32 %v537_v3  ;;  %v1320_v6 = vpack.c.bf16 %v1416_v1, %v1424_v51  ;;  %v580_v62 = vpop.permute.xlu1 %579 }
  0xb5   : > { %v1428_v7 = vpop.eup %1427  ;;  %v1318_v8 = vpack.c.bf16 %v1418_v52, %v1426_v55 }
  0xb6   : > { %v1430_v9 = vpop.eup %1429  ;;  %v1328_v10 = vpack.c.bf16 %v1420_v4, %v1428_v7 }
  0xb7   : > { %v1432_v11 = vpop.eup %1431  ;;  %1319 = vmatprep.subr.bf16.mxu0 %v1318_v8  ;;  %v1326_v12 = vpack.c.bf16 %v1422_v5, %v1430_v9 }
  0xb8   : > { %v1434_v13 = vpop.eup %1433  ;;  %1321 = vmatpush1.bf16.msra.mxu0 %v1320_v6 }
  0xb9   : > { %v1436_v14 = vpop.eup %1435  ;;  %1327 = vmatprep.subr.bf16.mxu1 %v1326_v12 }
  0xba   : > { %v1438_v15 = vpop.eup %1437  ;;  %1329 = vmatpush1.bf16.msra.mxu1 %v1328_v10 }
  0xbb   : > { %v1440_v16 = vpop.eup %1439 }
  0xbc   : > { %v1442_v17 = vpop.eup %1441  ;;  %v1324_v18 = vpack.c.bf16 %v1440_v16, %v1432_v11 }
  0xbd   : > { %v1444_v19 = vpop.eup %1443  ;;  %v1322_v23 = vpack.c.bf16 %v1442_v17, %v1434_v13 }
  0xbe   : > { %v1446_v24 = vpop.eup %1445  ;;  %v1332_v25 = vpack.c.bf16 %v1444_v19, %v1436_v14 }
  0xbf   : > { %1323 = vmatprep.subr.bf16.mxu0 %v1322_v23  ;;  %v1330_v26 = vpack.c.bf16 %v1446_v24, %v1438_v15 }
  0xc0   : > { %1325 = vmatpush1.bf16.msra.mxu0 %v1324_v18 }
  0xc1   : > { %1331 = vmatprep.subr.bf16.mxu1 %v1330_v26 }
  0xc2   : > { %1333 = vmatpush1.bf16.msra.mxu1 %v1332_v25 }
  0xc3   : > { %1294 = vmatmul.mubr.msk.f32.vlgmr.msra.gmra.mrb[0].mxu0 %vm582_vm0, %v554_v27 }
  0xc4   : > { %665 = vmatprep.mubr.f32.mxu0 %v1577_v20 }
  0xc5   : > { %1298 = vmatmul.mubr.msk.f32.vlgmr.msra.gmra.mrb[0].mxu1 %vm582_vm0, %v554_v27 }
  0xc6   : > { %754 = vmatprep.mubr.f32.mxu1 %v1577_v20 }
  0xc7   : > { %1295 = vmatmul.mubr.msk.f32.gmra.mrb[2].mxu0 %vm582_vm0, %v555_v29 }
  0xc8   : > { %671 = vmatprep.mubr.f32.mxu0 %v1577_v20 }
  0xc9   : > { %1299 = vmatmul.mubr.msk.f32.gmra.mrb[2].mxu1 %vm582_vm0, %v555_v29 }
  0xca   : > { %760 = vmatprep.mubr.f32.mxu1 %v1577_v20 }
  0xcb   : > { %1296 = vmatmul.mubr.msk.f32.gmra.mrb[4].mxu0 %vm582_vm0, %v556_v31 }
  0xcc   : > { %677 = vmatprep.mubr.f32.mxu0 %v1577_v20 }
  0xcd   : > { %1300 = vmatmul.mubr.msk.f32.gmra.mrb[4].mxu1 %vm582_vm0, %v556_v31 }
  0xce   : > { %766 = vmatprep.mubr.f32.mxu1 %v1577_v20 }
  0xcf   : > { %1297 = vmatmul.mubr.msk.f32.gmra.mrb[6].mxu0 %vm582_vm0, %v557_v32 }
  0xd0   : > { %893 = vmatprep.mubr.f32.mxu0 %v1577_v20 }
  0xd1   : > { %1301 = vmatmul.mubr.msk.f32.gmra.mrb[6].mxu1 %vm582_vm0, %v557_v32 }
  0xd2   : > { %982 = vmatprep.mubr.f32.mxu1 %v1577_v20 }
 0x196   : > { %v661_v34 = vpop.f32.mrb[0].mxu0 }
 0x197   : > { %v662_v35 = vadd.f32 %v661_v34, %v565_v33  ;;  %v663_v28 = vpop.f32.mrb[1].mxu0  ;;  %v790_v34 = vld [vmem:[%s1899_s5 + $0x8] sm:$0xff] }
 0x198   : > { %v750_v36 = vpop.f32.mrb[0].mxu1  ;;  %v664_v37 = vadd.f32 %v663_v28, %v565_v33  ;;  %v792_v28 = vld [vmem:[%s1899_s5 + $0x18] sm:$0xff] }
 0x199   : > { %1447 = vtanh.f32 %v662_v35  ;;  %v751_v38 = vadd.f32 %v750_v36, %v565_v33  ;;  %v752_v39 = vpop.f32.mrb[1].mxu1  ;;  %v791_v35 = vld [vmem:[%s1899_s5 + $0x10] sm:$0xff]  ;;  %v800_v36 = vpop.permute.xlu0 %799 }
 0x19a   : > { %1449 = vtanh.f32 %v664_v37  ;;  %v753_v41 = vadd.f32 %v752_v39, %v565_v33  ;;  %v667_v42 = vpop.f32.mrb[2].mxu0  ;;  %v789_v33 = vld [vmem:[%s1899_s5] sm:$0xff] }
 0x19b   : > { %1451 = vtanh.f32 %v751_v38  ;;  %v668_v45 = vadd.f32 %v667_v42, %v570_v40  ;;  %v669_v50 = vpop.f32.mrb[3].mxu0 }
 0x19c   : > { %1453 = vtanh.f32 %v753_v41  ;;  %v756_v48 = vpop.f32.mrb[2].mxu1  ;;  %v670_v53 = vadd.f32 %v669_v50, %v570_v40  ;;  %v805_v50 = vpop.permute.xlu1 %804 }
 0x19d   : > { %1455 = vtanh.f32 %v668_v45  ;;  %v757_v54 = vadd.f32 %v756_v48, %v570_v40  ;;  %v758_v49 = vpop.f32.mrb[3].mxu1 }
 0x19e   : > { %1457 = vtanh.f32 %v670_v53  ;;  %v759_v57 = vadd.f32 %v758_v49, %v570_v40  ;;  %v673_v43 = vpop.f32.mrb[4].mxu0 }
 0x19f   : > { %1459 = vtanh.f32 %v757_v54  ;;  %v674_v58 = vadd.f32 %v673_v43, %v575_v56  ;;  %v675_v44 = vpop.f32.mrb[5].mxu0 }
 0x1a0   : > { %1461 = vtanh.f32 %v759_v57  ;;  %v762_v59 = vpop.f32.mrb[4].mxu1  ;;  %v676_v60 = vadd.f32 %v675_v44, %v575_v56 }
 0x1a1   : > { %1463 = vtanh.f32 %v674_v58  ;;  %v763_v46 = vadd.f32 %v762_v59, %v575_v56  ;;  %v764_v61 = vpop.f32.mrb[5].mxu1  ;;  %v810_v58 = vpop.permute.xlu0 %809 }
 0x1a2   : > { %1465 = vtanh.f32 %v676_v60  ;;  %v765_v63 = vadd.f32 %v764_v61, %v575_v56  ;;  %v679_v47 = vpop.f32.mrb[6].mxu0 }
 0x1a3   : > { %v1448_v0 = vpop.eup %1447  ;;  %1467 = vtanh.f32 %v763_v46  ;;  %v680_v1 = vadd.f32 %v679_v47, %v580_v62  ;;  %v681_v2 = vpop.f32.mrb[7].mxu0 }
 0x1a4   : > { %v1450_v52 = vpop.eup %1449  ;;  %1469 = vtanh.f32 %v765_v63  ;;  %v768_v3 = vpop.f32.mrb[6].mxu1  ;;  %v682_v4 = vadd.f32 %v681_v2, %v580_v62 }
 0x1a5   : > { %v1452_v5 = vpop.eup %1451  ;;  %1471 = vtanh.f32 %v680_v1  ;;  %v769_v51 = vadd.f32 %v768_v3, %v580_v62  ;;  %v770_v55 = vpop.f32.mrb[7].mxu1 }
 0x1a6   : > { %v1454_v6 = vpop.eup %1453  ;;  %1473 = vtanh.f32 %v682_v4  ;;  %v771_v7 = vadd.f32 %v770_v55, %v580_v62 }
 0x1a7   : > { %v1456_v8 = vpop.eup %1455  ;;  %1475 = vtanh.f32 %v769_v51 }
 0x1a8   : > { %v1458_v9 = vpop.eup %1457  ;;  %1477 = vtanh.f32 %v771_v7  ;;  %v1336_v10 = vpack.c.bf16 %v1456_v8, %v1448_v0  ;;  %v815_v0 = vpop.permute.xlu1 %814 }
 0x1a9   : > { %v1460_v11 = vpop.eup %1459  ;;  %v1334_v12 = vpack.c.bf16 %v1458_v9, %v1450_v52 }
 0x1aa   : > { %v1462_v13 = vpop.eup %1461  ;;  %v1344_v14 = vpack.c.bf16 %v1460_v11, %v1452_v5 }
 0x1ab   : > { %v1464_v15 = vpop.eup %1463  ;;  %1335 = vmatprep.subr.bf16.mxu0 %v1334_v12  ;;  %v1342_v16 = vpack.c.bf16 %v1462_v13, %v1454_v6 }
 0x1ac   : > { %v1466_v17 = vpop.eup %1465  ;;  %1337 = vmatpush1.bf16.msra.mxu0 %v1336_v10 }
 0x1ad   : > { %v1468_v18 = vpop.eup %1467  ;;  %1343 = vmatprep.subr.bf16.mxu1 %v1342_v16 }
 0x1ae   : > { %v1470_v19 = vpop.eup %1469  ;;  %1345 = vmatpush1.bf16.msra.mxu1 %v1344_v14 }
 0x1af   : > { %v1472_v23 = vpop.eup %1471 }
 0x1b0   : > { %v1474_v24 = vpop.eup %1473  ;;  %v1340_v25 = vpack.c.bf16 %v1472_v23, %v1464_v15 }
 0x1b1   : > { %v1476_v26 = vpop.eup %1475  ;;  %v1338_v27 = vpack.c.bf16 %v1474_v24, %v1466_v17 }
 0x1b2   : > { %v1478_v29 = vpop.eup %1477  ;;  %v1348_v31 = vpack.c.bf16 %v1476_v26, %v1468_v18 }
 0x1b3   : > { %1339 = vmatprep.subr.bf16.mxu0 %v1338_v27  ;;  %v1346_v32 = vpack.c.bf16 %v1478_v29, %v1470_v19 }
 0x1b4   : > { %1341 = vmatpush1.bf16.msra.mxu0 %v1340_v25 }
 0x1b5   : > { %1347 = vmatprep.subr.bf16.mxu1 %v1346_v32 }
 0x1b6   : > { %1349 = vmatpush1.bf16.msra.mxu1 %v1348_v31 }
 0x1b7   : > { %1302 = vmatmul.mubr.msk.f32.vlgmr.msra.gmra.mrb[8].mxu0 %vm582_vm0, %v789_v33 }
 0x1b8   : > { %899 = vmatprep.mubr.f32.mxu0 %v1577_v20 }
 0x1b9   : > { %1306 = vmatmul.mubr.msk.f32.vlgmr.msra.gmra.mrb[8].mxu1 %vm582_vm0, %v789_v33 }
 0x1ba   : > { %988 = vmatprep.mubr.f32.mxu1 %v1577_v20 }
 0x1bb   : > { %1303 = vmatmul.mubr.msk.f32.gmra.mrb[10].mxu0 %vm582_vm0, %v790_v34 }
 0x1bc   : > { %905 = vmatprep.mubr.f32.mxu0 %v1577_v20 }
 0x1bd   : > { %1307 = vmatmul.mubr.msk.f32.gmra.mrb[10].mxu1 %vm582_vm0, %v790_v34 }
 0x1be   : > { %994 = vmatprep.mubr.f32.mxu1 %v1577_v20 }
 0x1bf   : > { %1304 = vmatmul.mubr.msk.f32.gmra.mrb[12].mxu0 %vm582_vm0, %v791_v35 }
 0x1c0   : > { %911 = vmatprep.mubr.f32.mxu0 %v1577_v20 }
 0x1c1   : > { %1308 = vmatmul.mubr.msk.f32.gmra.mrb[12].mxu1 %vm582_vm0, %v791_v35 }
 0x1c2   : > { %1000 = vmatprep.mubr.f32.mxu1 %v1577_v20 }
 0x1c3   : > { %1305 = vmatmul.mubr.msk.f32.gmra.mrb[14].mxu0 %vm582_vm0, %v792_v28 }
 0x1c4   : > { %1101 = vmatprep.mubr.f32.mxu0 %v1577_v20 }
 0x1c5   : > { %1309 = vmatmul.mubr.msk.f32.gmra.mrb[14].mxu1 %vm582_vm0, %v792_v28  ;;  %v1023_v28 = vld [vmem:[%s1901_s7] sm:$0x1] }
 0x1c6   : > { %1172 = vmatprep.mubr.f32.mxu1 %v1577_v20 }
 0x28a   : > { %v895_v37 = vpop.f32.mrb[8].mxu0 }
 0x28b   : > { %v896_v38 = vadd.f32 %v895_v37, %v800_v36  ;;  %v897_v39 = vpop.f32.mrb[9].mxu0 }
 0x28c   : > { %v984_v40 = vpop.f32.mrb[8].mxu1  ;;  %v898_v41 = vadd.f32 %v897_v39, %v800_v36 }
 0x28d   : > { %1479 = vtanh.f32 %v896_v38  ;;  %v985_v42 = vadd.f32 %v984_v40, %v800_v36  ;;  %v986_v45 = vpop.f32.mrb[9].mxu1  ;;  %v1028_v38 = vpop.permute.xlu0 %1027 }
 0x28e   : > { %1481 = vtanh.f32 %v898_v41  ;;  %v987_v48 = vadd.f32 %v986_v45, %v800_v36  ;;  %v901_v53 = vpop.f32.mrb[10].mxu0  ;;  %v1578_v36 = vmov 1966171168   ;;  %v1033_v40 = vrot.slane %v1028_v38, %v1743_v30 }
 0x28f   : > { %1483 = vtanh.f32 %v985_v42  ;;  %v902_v54 = vadd.f32 %v901_v53, %v805_v50  ;;  %v903_v49 = vpop.f32.mrb[11].mxu0  ;;  %v1186_v37 = vunpack.c.l.s4 %v1578_v36 }
 0x290   : > { %1485 = vtanh.f32 %v987_v48  ;;  %v990_v56 = vpop.f32.mrb[10].mxu1  ;;  %v904_v57 = vadd.f32 %v903_v49, %v805_v50 }
 0x291   : > { %1487 = vtanh.f32 %v902_v54  ;;  %v991_v20 = vadd.f32 %v990_v56, %v805_v50  ;;  %v992_v43 = vpop.f32.mrb[11].mxu1  ;;  %v1187_v39 = vunpack.c.0.s8 %v1186_v37 }
 0x292   : > { %1489 = vtanh.f32 %v904_v57  ;;  %v993_v44 = vadd.f32 %v992_v43, %v805_v50  ;;  %v907_v59 = vpop.f32.mrb[12].mxu0 }
 0x293   : > { %1491 = vtanh.f32 %v991_v20  ;;  %v908_v60 = vadd.f32 %v907_v59, %v810_v58  ;;  %v909_v46 = vpop.f32.mrb[13].mxu0  ;;  %v1190_v53 = vsub.s32 %v1187_v39, %v1733_v22 }
 0x294   : > { %1493 = vtanh.f32 %v993_v44  ;;  %v996_v61 = vpop.f32.mrb[12].mxu1  ;;  %v910_v62 = vadd.f32 %v909_v46, %v810_v58 }
 0x295   : > { %1495 = vtanh.f32 %v908_v60  ;;  %v997_v63 = vadd.f32 %v996_v61, %v810_v58  ;;  %v998_v47 = vpop.f32.mrb[13].mxu1 }
 0x296   : > { %1497 = vtanh.f32 %v910_v62  ;;  %v999_v1 = vadd.f32 %v998_v47, %v810_v58  ;;  %v913_v2 = vpop.f32.mrb[14].mxu0 }
 0x297   : > { %v1480_v52 = vpop.eup %1479  ;;  %1499 = vtanh.f32 %v997_v63  ;;  %v914_v3 = vadd.f32 %v913_v2, %v815_v0  ;;  %v915_v4 = vpop.f32.mrb[15].mxu0 }
 0x298   : > { %v1482_v5 = vpop.eup %1481  ;;  %1501 = vtanh.f32 %v999_v1  ;;  %v1002_v51 = vpop.f32.mrb[14].mxu1  ;;  %v916_v55 = vadd.f32 %v915_v4, %v815_v0 }
 0x299   : > { %v1484_v6 = vpop.eup %1483  ;;  %1503 = vtanh.f32 %v914_v3  ;;  %v1003_v7 = vadd.f32 %v1002_v51, %v815_v0  ;;  %v1004_v8 = vpop.f32.mrb[15].mxu1 }
 0x29a   : > { %v1486_v9 = vpop.eup %1485  ;;  %1505 = vtanh.f32 %v916_v55  ;;  %v1005_v10 = vadd.f32 %v1004_v8, %v815_v0 }
 0x29b   : > { %v1488_v11 = vpop.eup %1487  ;;  %1507 = vtanh.f32 %v1003_v7 }
 0x29c   : > { %v1490_v12 = vpop.eup %1489  ;;  %1509 = vtanh.f32 %v1005_v10  ;;  %v1352_v13 = vpack.c.bf16 %v1488_v11, %v1480_v52 }
 0x29d   : > { %v1492_v14 = vpop.eup %1491  ;;  %v1350_v15 = vpack.c.bf16 %v1490_v12, %v1482_v5 }
 0x29e   : > { %v1494_v16 = vpop.eup %1493  ;;  %v1360_v17 = vpack.c.bf16 %v1492_v14, %v1484_v6 }
 0x29f   : > { %v1496_v18 = vpop.eup %1495  ;;  %1351 = vmatprep.subr.bf16.mxu0 %v1350_v15  ;;  %v1358_v19 = vpack.c.bf16 %v1494_v16, %v1486_v9 }
 0x2a0   : > { %v1498_v23 = vpop.eup %1497  ;;  %1353 = vmatpush1.bf16.msra.mxu0 %v1352_v13 }
 0x2a1   : > { %v1500_v24 = vpop.eup %1499  ;;  %1359 = vmatprep.subr.bf16.mxu1 %v1358_v19 }
 0x2a2   : > { %v1502_v25 = vpop.eup %1501  ;;  %1361 = vmatpush1.bf16.msra.mxu1 %v1360_v17 }
 0x2a3   : > { %v1504_v26 = vpop.eup %1503 }
 0x2a4   : > { %v1506_v27 = vpop.eup %1505  ;;  %v1356_v29 = vpack.c.bf16 %v1504_v26, %v1496_v18 }
 0x2a5   : > { %v1508_v31 = vpop.eup %1507  ;;  %v1354_v32 = vpack.c.bf16 %v1506_v27, %v1498_v23 }
 0x2a6   : > { %v1510_v33 = vpop.eup %1509  ;;  %v1364_v34 = vpack.c.bf16 %v1508_v31, %v1500_v24 }
 0x2a7   : > { %1355 = vmatprep.subr.bf16.mxu0 %v1354_v32  ;;  %v1362_v35 = vpack.c.bf16 %v1510_v33, %v1502_v25 }
 0x2a8   : > { %1357 = vmatpush1.bf16.msra.mxu0 %v1356_v29 }
 0x2a9   : > { %1363 = vmatprep.subr.bf16.mxu1 %v1362_v35 }
 0x2aa   : > { %1365 = vmatpush1.bf16.msra.mxu1 %v1364_v34 }
 0x2ab   : > { %1310 = vmatmul.mubr.msk.f32.vlgmr.msra.gmra.mrb[16].mxu0 %vm582_vm0, %v1023_v28 }
 0x2ad   : > { %1311 = vmatmul.mubr.msk.f32.vlgmr.msra.gmra.mrb[16].mxu1 %vm582_vm0, %v1023_v28 }
 0x37e   : > { %v1103_v41 = vpop.f32.mrb[16].mxu0 }
 0x37f   : > { %v1104_v42 = vadd.f32 %v1103_v41, %v1033_v40  ;;  %v1105_v45 = vpop.f32.mrb[17].mxu0 }
 0x380   : > { %v1174_v50 = vpop.f32.mrb[16].mxu1  ;;  %v1106_v48 = vadd.f32 %v1105_v45, %v1033_v40 }
 0x381   : > { %v1175_v54 = vadd.f32 %v1174_v50, %v1033_v40  ;;  %v1176_v49 = vpop.f32.mrb[17].mxu1 }
 0x382   : > { %v1183_v56 = vcombine.low %v1104_v42, %v1106_v48  ;;  %v1177_v57 = vadd.f32 %v1176_v49, %v1033_v40 }
 0x384   : > { %v1191_v20 = vrot.slane %v1183_v56, %v1190_v53  ;;  %v1184_v43 = vcombine.low %v1175_v54, %v1177_v57 }
 0x386   : > { %v1198_v58 = vrot.slane %v1184_v43, %v1190_v53 }
 0x388   : > { %v1199_v30 = vcombine.low %v1191_v20, %v1198_v58 }
 0x38a   : > { %v1206_v44 = vrot.slane %v1199_v30, %v1190_v53 }
 0x38c   : > { %1212 = vst.msk [vmem:[%s328_s28] sm:$0xf] %vm1210_vm1, %v1206_v44 }
 0x38d   : > { %1524 = shalt.err (!%p1521_p3)
}
 0x38e   : > { %s1525_s24 = scalar_lea.hbm %s1852_s15, 64  ;;  %s1529_s27 = scalar_lea.hbm %s1903_s9, 128 }
 0x38f   : > { %p1526_p4 = scmp.ne.s32.totalorder %s1852_s15, %s1525_s24  ;;  %p1530_p9 = scmp.lt.u32.totalorder %s1852_s15, %s1903_s9 }
 0x390   : > { %p1531_p10 = scmp.lt.u32.totalorder %s1529_s27, %s1525_s24  ;;  %p1533_p12 = scmp.lt.u32.totalorder %s1525_s24, %s1852_s15 }
 0x391   : > { %p1527_p7 = pnand %p1526_p4, %p1671_p5 }
 0x392   : > { %p1532_p11 = por %p1531_p10, %p1530_p9 }
 0x393   : > { %p1528_p8 = pneg %p1527_p7 }
 0x394   : > { %p1534_p13 = por %p1533_p12, %p1532_p11 }
 0x396   : > { %p1535_p0 = pnand %p1534_p13, %p1528_p8 }
 0x398   : > { %1538 = shalt.err (!%p1535_p0)
}
 0x399   : > { %1366 = dma.vmem_to_hbm [thread:$0]  (%p1671_p5), %s1854_s29, 64, %s1852_s15, %s1214_s17  }
 0x39a PF: > { %p1372_p1 = scmp.ge.s32.totalorder %s1573_s14, 2  ;;  %s1240_s10 = sand.u32 1, %s1561_s11  }
 0x39b   : > { %s1241_s18 = scalar_lea.sflag [#allocation4], %s1240_s10 }
 0x39c   : > { %p1369_p2 = pnand %p1372_p1, %p1675_p6 }
 0x39e   : > { %1556 = dma.done.wait (!%p1369_p2), %s1241_s18, 64  }
 0x39f   : > { %1558 = vsyncadd (!%p1369_p2), %s1241_s18, 4294967232  ;;  %p21_p3 = scmp.ge.s32.totalorder %s1658_s16, 4   ;;  %s1906_s11 = smov %s1565_s12 }
 0x3a0   : > { %s1907_s12 = smov %s1569_s13  ;;  %s1908_s13 = smov %s1669_s19 }
 0x3a1   : > { %s1909_s14 = smov %s1658_s16  ;;  %23 = sbr.rel (!%p21_p3) target bundleno = 6 (0x6), region = 91 }
 0x3a8   :  { %1246 = vsyncpa [#allocation4], 1 }
 0x3a9   :  { %1248 = vsyncpa [#allocation4 + $0x1], 1 }

</bundles_post_ra>
